<compile_context>
chip_gen: v7x
topology: tpu7x:2x2x1
jax: 0.10.0
libtpu: 0.0.40
codegen_flags: <defaults>
</compile_context>

<pallas_src>
import jax
import jax.numpy as jnp
from jax.experimental import pallas as pl
from jax.experimental.pallas import tpu as pltpu


# ----------------------------------------------------------------------------
# Python-side helper: exact semantics of BaseConstraint.get_dimensions
# ----------------------------------------------------------------------------
def get_dimensions(x, exclude_batch: bool = True):
    start_dim = 1 if exclude_batch else 0
    return tuple(range(start_dim, x.ndim))


# ----------------------------------------------------------------------------
# Tiling knobs
# ----------------------------------------------------------------------------
_LANE = 128
_BLOCK_BYTES = 8 * 1024 * 1024    # target bytes per pipelined block (multi-MiB)
_VMEM_LIMIT = 48 * 1024 * 1024    # scoped VMEM: generous on v5e/v6e (128 MiB
                                  # physical), still <= v7x's 64 MiB per TC.
_MAX_TN = 32 * 1024               # lane-tile cap (bounds in-kernel unroll)
_MAX_ROWS = 64                    # row cap for vreg-resident accumulators


# ----------------------------------------------------------------------------
# 1) Pass-through forward (shape-preserving contract) as a tiled Pallas copy
# ----------------------------------------------------------------------------
def _copy_kernel(x_ref, o_ref):
    # TODO(synk): concrete constraint math (scale / clip / normalize) fuses
    # here so the whole constraint stays a single HBM pass.
    o_ref[...] = x_ref[...]


def _slab_cols(total):
    """Largest multiple-of-128 divisor of `total` (capped) whose row count is a
    multiple of 8 (sublane-full vregs, lane-dense stores); falls back to any
    multiple-of-128 divisor; returns None if no such divisor exists."""
    best_any, best_full = None, None
    c = _LANE
    cap = min(total, 64 * 1024)
    while c <= cap:
        if total % c == 0:
            best_any = c
            if (total // c) % 8 == 0:
                best_full = c
        c += _LANE
    return best_full if best_full is not None else best_any


@jax.jit
def base_constraint_forward(x):
    """Identity pass-through (abstract forward's contract): same shape/dtype.

    For a literal identity one would just `return x`; the tiled Pallas copy is
    kept as the fusion template for concrete constraints.  No pad / slice
    around the kernel — edge tiles overhang and their writes are dropped.
    """
    itemsize = x.dtype.itemsize
    total = x.size
    B = x.shape[0]
    N = total // B

    cols = _slab_cols(total)
    if cols is not None:
        # Tall, sublane-full slab: tile along rows.
        rows = total // cols
        x2 = x.reshape(rows, cols)
        tr = max(8, min(rows, (_BLOCK_BYTES // (cols * itemsize)) // 8 * 8))
        grid = (pl.cdiv(rows, tr),)
        in_spec = pl.BlockSpec((tr, cols), lambda i: (i, 0))
        out_spec = pl.BlockSpec((tr, cols), lambda i: (i, 0))
        out_2d = (rows, cols)
    else:
        # total not divisible by 128: (B, N) view, tile the lane axis.
        x2 = x.reshape(B, N)
        tn = max(_LANE, min((_BLOCK_BYTES // (B * itemsize)) // _LANE * _LANE,
                            pl.cdiv(N, _LANE) * _LANE))
        grid = (pl.cdiv(N, tn),)
        in_spec = pl.BlockSpec((B, tn), lambda i: (0, i))
        out_spec = pl.BlockSpec((B, tn), lambda i: (0, i))
        out_2d = (B, N)

    out = pl.pallas_call(
        _copy_kernel,
        out_shape=jax.ShapeDtypeStruct(out_2d, x.dtype),
        grid=grid,
        in_specs=[in_spec],
        out_specs=out_spec,
        compiler_params=pltpu.CompilerParams(
            dimension_semantics=("parallel",),
            vmem_limit_bytes=_VMEM_LIMIT,
        ),
    )(x2)
    return out.reshape(x.shape)


# ----------------------------------------------------------------------------
# 2) Per-batch mean / L2 norm over get_dimensions(x)
# ----------------------------------------------------------------------------
def _pick_subrows(B, N):
    """Divisor R of N so that rows = B*R is a multiple of 8 (sublane-full),
    rows <= _MAX_ROWS and cols = N//R stays lane-dense (>= 128).  Largest such
    R; R = 1 fallback (block first dim then equals the full array dim)."""
    best = 1
    r = 1
    while B * r <= _MAX_ROWS and r <= N:
        if N % r == 0 and (B * r) % 8 == 0 and (N // r >= _LANE or r == 1):
            best = r
        r += 1
    return best


@jax.jit
def batch_statistics(x):
    """Per-batch mean and L2 norm over get_dimensions(x) (all non-batch dims).

    Equivalent to:
        dims = BaseConstraint.get_dimensions(x)
        mean = x.mean(dim=dims)          # shape [B]
        norm = x.norm(p=2, dim=dims)     # shape [B]
    """
    B = x.shape[0]
    N = x.size // B
    itemsize = x.dtype.itemsize

    # Sublane packing without any padding copy: split each batch row into R
    # contiguous sub-rows where R divides N exactly.
    R = _pick_subrows(B, N)
    rows = B * R
    cols = N // R
    xr = x.reshape(rows, cols)

    # Lane tile: as large as the block budget allows (multiple of 128).
    tn = (_BLOCK_BYTES // (rows * itemsize)) // _LANE * _LANE
    tn = max(_LANE, min(tn, _MAX_TN, pl.cdiv(cols, _LANE) * _LANE))
    n_tot = pl.cdiv(cols, tn)
    need_mask = (cols % tn) != 0        # ragged last tile overhangs -> mask it

    # Two 'parallel' chunks engage both v7x TensorCores when the tiles split
    # evenly; on v5e/v6e this axis is just a serial loop (negligible cost).
    npar = 2 if (n_tot >= 2 and n_tot % 2 == 0) else 1
    n_k = n_tot // npar
    n_fold = tn // _LANE
    use_local_acc = rows <= _MAX_ROWS   # keep (rows,128) partials in vregs

    def kernel(x_ref, psum_ref, pss_ref):
        p = pl.program_id(0)
        k = pl.program_id(1)

        # The (rows, 128) output blocks are the resident accumulators.
        @pl.when(k == 0)
        def _():
            psum_ref[...] = jnp.zeros_like(psum_ref)
            pss_ref[...] = jnp.zeros_like(pss_ref)

        start = (p * n_k + k) * tn
        lane = jax.lax.broadcasted_iota(jnp.int32, (rows, _LANE), 1)

        def load_col(j):
            v = x_ref[:, pl.ds(j * _LANE, _LANE)].astype(jnp.float32)
            if need_mask:
                # OOB lanes of the overhanging tile read garbage -> zero them.
                v = jnp.where(lane + (start + j * _LANE) < cols, v, 0.0)
            return v

        if use_local_acc:
            s = load_col(0)
            q = s * s
            for j in range(1, n_fold):
                v = load_col(j)
                s = s + v
                q = q + v * v
            psum_ref[...] += s
            pss_ref[...] += q
        else:
            for j in range(n_fold):
                v = load_col(j)
                psum_ref[...] += v
                pss_ref[...] += v * v

    psum, pss = pl.pallas_call(
        kernel,
        out_shape=(
            jax.ShapeDtypeStruct((npar, rows, _LANE), jnp.float32),
            jax.ShapeDtypeStruct((npar, rows, _LANE), jnp.float32),
        ),
        grid=(npar, n_k),
        in_specs=[pl.BlockSpec((rows, tn), lambda p, k: (0, p * n_k + k))],
        out_specs=(
            pl.BlockSpec((None, rows, _LANE), lambda p, k: (p, 0, 0)),
            pl.BlockSpec((None, rows, _LANE), lambda p, k: (p, 0, 0)),
        ),
        compiler_params=pltpu.CompilerParams(
            dimension_semantics=("parallel", "arbitrary"),
            vmem_limit_bytes=_VMEM_LIMIT,
        ),
    )(xr)

    # Tiny cross-lane / cross-chunk collapse once, in the wrapper.
    s = jnp.sum(psum, axis=(0, 2)).reshape(B, R).sum(axis=1)   # (B,)
    ss = jnp.sum(pss, axis=(0, 2)).reshape(B, R).sum(axis=1)   # (B,)
    mean = s / N
    norm = jnp.sqrt(ss)
    return mean, norm


# ----------------------------------------------------------------------------
# Driver
# ----------------------------------------------------------------------------
if __name__ == "__main__":
    key = jax.random.PRNGKey(0)
    # NCHW, small shapes: batch=2, channels=4, spatial=16x16
    x = jax.random.normal(key, (2, 4, 16, 16), dtype=jnp.float32)

    # 1) pass-through forward (abstract contract: same essential dimensions)
    y = base_constraint_forward(x)
    y = jax.block_until_ready(y)
    assert y.shape == x.shape and y.dtype == x.dtype
    assert bool(jnp.allclose(y, x))

    # 2) reductions over get_dimensions(x)
    dims = get_dimensions(x)                      # (1, 2, 3)
    mean, norm = batch_statistics(x)
    mean, norm = jax.block_until_ready((mean, norm))

    ref_mean = jnp.mean(x, axis=dims)
    ref_norm = jnp.sqrt(jnp.sum(x * x, axis=dims))
    assert bool(jnp.allclose(mean, ref_mean, atol=1e-5, rtol=1e-5))
    assert bool(jnp.allclose(norm, ref_norm, atol=1e-4, rtol=1e-5))

    print("KERNEL_OK")
</pallas_src>

<mosaic_0001>
module attributes {stable_mosaic.version = 11 : i64} {
  func.func @_copy_kernel(%arg0: i32, %arg1: memref<8x256xf32, #tpu.memory_space<vmem>>, %arg2: memref<8x256xf32, #tpu.memory_space<vmem>>) attributes {dimension_semantics = [#tpu.dimension_semantics<parallel>], iteration_bounds = array<i64: 1>, scalar_prefetch = 0 : i64, scratch_operands = 0 : i64, tpu.core_type = #tpu.core_type<tc>, window_params = [{transform_indices = @transform_0, window_bounds = array<i64: 8, 256>}, {transform_indices = @transform_1, window_bounds = array<i64: 8, 256>}]} {
    %c0 = arith.constant 0 : index
    %c0_0 = arith.constant 0 : index
    %0 = vector.load %arg1[%c0, %c0_0] : memref<8x256xf32, #tpu.memory_space<vmem>>, vector<8x256xf32>
    %c0_1 = arith.constant 0 : index
    %c0_2 = arith.constant 0 : index
    %1 = vector.load %arg2[%c0_1, %c0_2] : memref<8x256xf32, #tpu.memory_space<vmem>>, vector<8x256xf32>
    tpu.vector_store %arg2[%c0_1, %c0_2], %0 {strides = array<i32>} : memref<8x256xf32, #tpu.memory_space<vmem>>, vector<8x256xf32>,
    return
  }
  func.func @transform_0(%arg0: i32) -> (i32, i32) {
    %c0_i32 = arith.constant 0 : i32
    %c0_i32_0 = arith.constant 0 : i32
    return %arg0, %c0_i32 : i32, i32
  }
  func.func @transform_1(%arg0: i32) -> (i32, i32) {
    %c0_i32 = arith.constant 0 : i32
    %c0_i32_0 = arith.constant 0 : i32
    return %arg0, %c0_i32 : i32, i32
  }
}

</mosaic_0001>

<bundles_post_ra>
// kernel: base_constraint_forward.1
= control target key start
LH: loop header
LB: loop body
LE: loop exit
PB: predicated region body
PF: predicated region fallthrough
CT: control target
= control target key end

     0   :  { %s38_s0 = inlined_call_operand.vmem [shape: f32[8,256], index: 0, kind: input, shape index: {}]   ;;  %s39_s1 = inlined_call_operand.vmem [shape: f32[8,256], index: 1, kind: output, shape index: {}]  }
   0x1   :  { %v8_v0 = vld [vmem:[%s38_s0] sm:$0xff]  ;;  %v9_v1 = vld [vmem:[%s38_s0 + $0x8] sm:$0xff] }
   0x2   :  { %10 = vst [vmem:[%s39_s1] sm:$0xff] %v8_v0  ;;  %11 = vst [vmem:[%s39_s1 + $0x8] sm:$0xff] %v9_v1 }

</bundles_post_ra>
